<compile_context>
chip_gen: v5e
topology: v5e:2x2
jax: 0.10.0
libtpu: 0.0.40
codegen_flags: <defaults>
</compile_context>

<pallas_src>
import functools

import jax
import jax.numpy as jnp
from jax.experimental import pallas as pl
from jax.experimental.pallas import tpu as pltpu


def _masked_conv_kernel(x_ref, w_ref, b_ref, o_ref, col_ref, *,
                        Nb, Cp, kH, kW, Wp, Lpad):
    """One batch-block per grid step.

    x_ref  : (Nb, Cp, Lin)       spatially padded, channel-padded flat images (NCHW order)
    w_ref  : (Cout, kH*kW*Cp)    pre-masked weights, tap-major rows, Cin padded to Cp
    b_ref  : (Cout, 1)           bias (broadcasts over the lane axis)
    o_ref  : (Nb, Cout, Lpad)    flat output, Lpad = round_up(Ho*Wp, 128)
    col_ref: (kH*kW*Cp, Nb*Lpad) VMEM im2col scratch (dtype matches x)
    """
    # --- im2col fill: every tap is a contiguous lane-slice of the flat image.
    #     Destination rows are full 8/16-sublane groups at aligned offsets,
    #     destination lane offsets n*Lpad are multiples of 128 -> unmasked stores.
    for n in range(Nb):
        base = n * Lpad
        for kh in range(kH):
            for kw in range(kW):
                off = kh * Wp + kw
                r = (kh * kW + kw) * Cp
                col_ref[r:r + Cp, base:base + Lpad] = x_ref[n, :, off:off + Lpad]

    # --- one fused MXU contraction for the whole batch block (f32 accumulate),
    #     one bias broadcast.
    acc = jnp.dot(w_ref[...], col_ref[...], preferred_element_type=jnp.float32)
    acc = acc + b_ref[...]

    # --- per-image stores: each slice starts at a 128-multiple lane offset, so
    #     these are aligned, unmasked vst's, and the output is already NCHW-ordered.
    for n in range(Nb):
        o_ref[n] = acc[:, n * Lpad:(n + 1) * Lpad].astype(o_ref.dtype)


def _pick_batch_block(N):
    # Prefer an even number of grid steps (v7x megacore sharding), Nb <= 8 to
    # amortize the ~0.35us/step overhead.  Nb=1 always divides -> no silent
    # semantic surprises for odd N.
    for nb in (8, 4, 2, 1):
        if N % nb == 0 and (N // nb) % 2 == 0:
            return nb
    for nb in (8, 4, 2, 1):
        if N % nb == 0:
            return nb
    return 1


def masked_conv2d(x_nchw, weight_oihw, mask_oihw, bias, *, padding=1,
                  batch_block=None, compute_dtype=None):
    N, Cin, H, W = x_nchw.shape
    Cout, Cin_w, kH, kW = weight_oihw.shape
    assert Cin == Cin_w

    out_dtype = x_nchw.dtype
    dt = jnp.dtype(compute_dtype) if compute_dtype is not None else jnp.dtype(out_dtype)

    Hp, Wp = H + 2 * padding, W + 2 * padding
    Ho, Wo = Hp - kH + 1, Wp - kW + 1

    # Sublane group for the compute dtype (8 for 4-byte, 16 for 2-byte).
    sub = 8 if dt.itemsize == 4 else 16
    Cp = ((Cin + sub - 1) // sub) * sub          # per-tap padded channel count
    K = kH * kW * Cp                              # fused contraction dim

    Lvalid = Ho * Wp                              # meaningful lanes per image
    Lpad = ((Lvalid + 127) // 128) * 128          # lane-dense per-image slab
    max_off = (kH - 1) * Wp + (kW - 1)
    Lin_needed = max_off + Lpad                   # full-width, unmasked tap copies
    pad_rows = max(0, -(-(Lin_needed - Hp * Wp) // Wp))
    Lin = (Hp + pad_rows) * Wp

    # --- static prep on tiny tensors (once, outside the kernel) -------------
    # Pre-mask the weights; reorder OIHW -> (Cout, kH, kW, Cin); pad Cin -> Cp
    # with zeros (matches the zero-padded input channels); flatten to (Cout, K)
    # so column index = (kh*kW + kw)*Cp + cin matches the im2col row order.
    w = (weight_oihw * mask_oihw).astype(dt)
    w = jnp.transpose(w, (0, 2, 3, 1))
    w = jnp.pad(w, ((0, 0), (0, 0), (0, 0), (0, Cp - Cin))).reshape(Cout, K)
    b = bias.reshape(Cout, 1).astype(jnp.float32)

    # Activation stays NCHW.  ONE pad call: channels -> Cp, H gets the usual
    # `padding` plus `pad_rows` extra zero rows at the bottom (covers the tap
    # overhang of the last output row AND the Lpad overcompute), W -> padding.
    x = jnp.pad(x_nchw.astype(dt),
                ((0, 0), (0, Cp - Cin),
                 (padding, padding + pad_rows), (padding, padding)))
    x = x.reshape(N, Cp, Lin)                     # free row-major reshape

    if batch_block is None:
        Nb = _pick_batch_block(N)
    else:
        Nb = batch_block
        assert N % Nb == 0, "batch_block must divide N"
    G = N // Nb

    # Explicit VMEM budget (v7x has only 64 MiB physical / 32 MiB scoped default).
    est = (2 * Nb * Cp * Lin * dt.itemsize            # x block, double buffered
           + 2 * Nb * Cout * Lpad * jnp.dtype(out_dtype).itemsize   # out block
           + K * Nb * Lpad * dt.itemsize              # col scratch
           + Cout * K * dt.itemsize + Cout * 4)       # weights + bias
    vmem_limit = int(min(128 * 1024 * 1024, max(32 * 1024 * 1024, 2 * est)))

    kernel = functools.partial(_masked_conv_kernel, Nb=Nb, Cp=Cp,
                               kH=kH, kW=kW, Wp=Wp, Lpad=Lpad)

    out_flat = pl.pallas_call(
        kernel,
        out_shape=jax.ShapeDtypeStruct((N, Cout, Lpad), out_dtype),
        grid=(G,),
        in_specs=[
            pl.BlockSpec((Nb, Cp, Lin), lambda g: (g, 0, 0)),
            pl.BlockSpec((Cout, K), lambda g: (0, 0)),
            pl.BlockSpec((Cout, 1), lambda g: (0, 0)),
        ],
        out_specs=pl.BlockSpec((Nb, Cout, Lpad), lambda g: (g, 0, 0)),
        scratch_shapes=[pltpu.VMEM((K, Nb * Lpad), dt)],
        compiler_params=pltpu.CompilerParams(
            dimension_semantics=("parallel",),
            vmem_limit_bytes=vmem_limit),
    )(x, w, b)

    # Output is already NCHW: drop the Lpad tail, un-flatten, crop the width
    # padding columns.  (XLA fuses this into one copy; when this layer feeds
    # another op, fold the crop into that consumer instead.)
    return out_flat[..., :Lvalid].reshape(N, Cout, Ho, Wp)[..., :Wo]


def make_pixelcnn_mask(mask_type, Cout, Cin, kH, kW, dtype=jnp.float32):
    assert mask_type in {"A", "B"}
    mask = jnp.ones((Cout, Cin, kH, kW), dtype=dtype)
    # mask[:, :, kH//2, kW//2 + (mask_type == 'B'):] = 0
    mask = mask.at[:, :, kH // 2, kW // 2 + (1 if mask_type == "B" else 0):].set(0)
    # mask[:, :, kH//2 + 1:] = 0
    mask = mask.at[:, :, kH // 2 + 1:, :].set(0)
    return mask


if __name__ == "__main__":
    # MaskedConv2d('A', in_channels=4, out_channels=8, kernel_size=3, padding=1)
    N, Cin, H, W = 2, 4, 16, 16
    Cout, kH, kW = 8, 3, 3
    mask_type = "A"

    key = jax.random.PRNGKey(0)
    kx, kw_, kb = jax.random.split(key, 3)
    x = jax.random.normal(kx, (N, Cin, H, W), dtype=jnp.float32)
    weight = jax.random.normal(kw_, (Cout, Cin, kH, kW), dtype=jnp.float32) * 0.1
    bias = jax.random.normal(kb, (Cout,), dtype=jnp.float32) * 0.1
    mask = make_pixelcnn_mask(mask_type, Cout, Cin, kH, kW)

    # f32 end-to-end here; on v5e pass compute_dtype=jnp.bfloat16 (f32 accumulate).
    out = masked_conv2d(x, weight, mask, bias, padding=1)
    out = jax.block_until_ready(out)

    # Reference check against XLA's conv (same masked weights).
    ref = jax.lax.conv_general_dilated(
        x, weight * mask, window_strides=(1, 1),
        padding=((1, 1), (1, 1)),
        dimension_numbers=("NCHW", "OIHW", "NCHW"),
    ) + bias[None, :, None, None]
    assert out.shape == (N, Cout, H, W)
    assert jnp.allclose(out, ref, atol=1e-4, rtol=1e-4), "mismatch vs reference"

    print("KERNEL_OK")
</pallas_src>

<mosaic_0001>
module attributes {stable_mosaic.version = 11 : i64} {
  func.func @_masked_conv_kernel(%arg0: i32, %arg1: memref<1x8x432xf32, #tpu.memory_space<vmem>>, %arg2: memref<8x72xf32, #tpu.memory_space<vmem>>, %arg3: memref<8x1xf32, #tpu.memory_space<vmem>>, %arg4: memref<1x8x384xf32, #tpu.memory_space<vmem>>, %arg5: memref<72x384xf32, #tpu.memory_space<vmem>>) attributes {dimension_semantics = [#tpu.dimension_semantics<parallel>], iteration_bounds = array<i64: 2>, scalar_prefetch = 0 : i64, scratch_operands = 1 : i64, tpu.core_type = #tpu.core_type<tc>, window_params = [{transform_indices = @transform_0, window_bounds = array<i64: 1, 8, 432>}, {pipeline_mode = #tpu.pipeline_mode<synchronous>, transform_indices = @transform_1, window_bounds = array<i64: 8, 72>}, {pipeline_mode = #tpu.pipeline_mode<synchronous>, transform_indices = @transform_2, window_bounds = array<i64: 8, 1>}, {transform_indices = @transform_3, window_bounds = array<i64: 1, 8, 384>}]} {
    %c0 = arith.constant 0 : index
    %c0_0 = arith.constant 0 : index
    %c0_1 = arith.constant 0 : index
    %0 = vector.load %arg1[%c0, %c0_0, %c0_1] : memref<1x8x432xf32, #tpu.memory_space<vmem>>, vector<1x8x384xf32>
    %1 = vector.shape_cast %0 : vector<1x8x384xf32> to vector<8x384xf32>
    %c0_2 = arith.constant 0 : index
    %c0_3 = arith.constant 0 : index
    %2 = vector.load %arg5[%c0_2, %c0_3] : memref<72x384xf32, #tpu.memory_space<vmem>>, vector<8x384xf32>
    tpu.vector_store %arg5[%c0_2, %c0_3], %1 {strides = array<i32>} : memref<72x384xf32, #tpu.memory_space<vmem>>, vector<8x384xf32>,
    %c0_4 = arith.constant 0 : index
    %c0_5 = arith.constant 0 : index
    %c1 = arith.constant 1 : index
    %3 = vector.load %arg1[%c0_4, %c0_5, %c1] : memref<1x8x432xf32, #tpu.memory_space<vmem>>, vector<1x8x384xf32>
    %4 = vector.shape_cast %3 : vector<1x8x384xf32> to vector<8x384xf32>
    %c8 = arith.constant 8 : index
    %c0_6 = arith.constant 0 : index
    %5 = vector.load %arg5[%c8, %c0_6] : memref<72x384xf32, #tpu.memory_space<vmem>>, vector<8x384xf32>
    tpu.vector_store %arg5[%c8, %c0_6], %4 {strides = array<i32>} : memref<72x384xf32, #tpu.memory_space<vmem>>, vector<8x384xf32>,
    %c0_7 = arith.constant 0 : index
    %c0_8 = arith.constant 0 : index
    %c2 = arith.constant 2 : index
    %6 = vector.load %arg1[%c0_7, %c0_8, %c2] : memref<1x8x432xf32, #tpu.memory_space<vmem>>, vector<1x8x384xf32>
    %7 = vector.shape_cast %6 : vector<1x8x384xf32> to vector<8x384xf32>
    %c16 = arith.constant 16 : index
    %c0_9 = arith.constant 0 : index
    %8 = vector.load %arg5[%c16, %c0_9] : memref<72x384xf32, #tpu.memory_space<vmem>>, vector<8x384xf32>
    tpu.vector_store %arg5[%c16, %c0_9], %7 {strides = array<i32>} : memref<72x384xf32, #tpu.memory_space<vmem>>, vector<8x384xf32>,
    %c0_10 = arith.constant 0 : index
    %c0_11 = arith.constant 0 : index
    %c18 = arith.constant 18 : index
    %9 = vector.load %arg1[%c0_10, %c0_11, %c18] : memref<1x8x432xf32, #tpu.memory_space<vmem>>, vector<1x8x384xf32>
    %10 = vector.shape_cast %9 : vector<1x8x384xf32> to vector<8x384xf32>
    %c24 = arith.constant 24 : index
    %c0_12 = arith.constant 0 : index
    %11 = vector.load %arg5[%c24, %c0_12] : memref<72x384xf32, #tpu.memory_space<vmem>>, vector<8x384xf32>
    tpu.vector_store %arg5[%c24, %c0_12], %10 {strides = array<i32>} : memref<72x384xf32, #tpu.memory_space<vmem>>, vector<8x384xf32>,
    %c0_13 = arith.constant 0 : index
    %c0_14 = arith.constant 0 : index
    %c19 = arith.constant 19 : index
    %12 = vector.load %arg1[%c0_13, %c0_14, %c19] : memref<1x8x432xf32, #tpu.memory_space<vmem>>, vector<1x8x384xf32>
    %13 = vector.shape_cast %12 : vector<1x8x384xf32> to vector<8x384xf32>
    %c32 = arith.constant 32 : index
    %c0_15 = arith.constant 0 : index
    %14 = vector.load %arg5[%c32, %c0_15] : memref<72x384xf32, #tpu.memory_space<vmem>>, vector<8x384xf32>
    tpu.vector_store %arg5[%c32, %c0_15], %13 {strides = array<i32>} : memref<72x384xf32, #tpu.memory_space<vmem>>, vector<8x384xf32>,
    %c0_16 = arith.constant 0 : index
    %c0_17 = arith.constant 0 : index
    %c20 = arith.constant 20 : index
    %15 = vector.load %arg1[%c0_16, %c0_17, %c20] : memref<1x8x432xf32, #tpu.memory_space<vmem>>, vector<1x8x384xf32>
    %16 = vector.shape_cast %15 : vector<1x8x384xf32> to vector<8x384xf32>
    %c40 = arith.constant 40 : index
    %c0_18 = arith.constant 0 : index
    %17 = vector.load %arg5[%c40, %c0_18] : memref<72x384xf32, #tpu.memory_space<vmem>>, vector<8x384xf32>
    tpu.vector_store %arg5[%c40, %c0_18], %16 {strides = array<i32>} : memref<72x384xf32, #tpu.memory_space<vmem>>, vector<8x384xf32>,
    %c0_19 = arith.constant 0 : index
    %c0_20 = arith.constant 0 : index
    %c36 = arith.constant 36 : index
    %18 = vector.load %arg1[%c0_19, %c0_20, %c36] : memref<1x8x432xf32, #tpu.memory_space<vmem>>, vector<1x8x384xf32>
    %19 = vector.shape_cast %18 : vector<1x8x384xf32> to vector<8x384xf32>
    %c48 = arith.constant 48 : index
    %c0_21 = arith.constant 0 : index
    %20 = vector.load %arg5[%c48, %c0_21] : memref<72x384xf32, #tpu.memory_space<vmem>>, vector<8x384xf32>
    tpu.vector_store %arg5[%c48, %c0_21], %19 {strides = array<i32>} : memref<72x384xf32, #tpu.memory_space<vmem>>, vector<8x384xf32>,
    %c0_22 = arith.constant 0 : index
    %c0_23 = arith.constant 0 : index
    %c37 = arith.constant 37 : index
    %21 = vector.load %arg1[%c0_22, %c0_23, %c37] : memref<1x8x432xf32, #tpu.memory_space<vmem>>, vector<1x8x384xf32>
    %22 = vector.shape_cast %21 : vector<1x8x384xf32> to vector<8x384xf32>
    %c56 = arith.constant 56 : index
    %c0_24 = arith.constant 0 : index
    %23 = vector.load %arg5[%c56, %c0_24] : memref<72x384xf32, #tpu.memory_space<vmem>>, vector<8x384xf32>
    tpu.vector_store %arg5[%c56, %c0_24], %22 {strides = array<i32>} : memref<72x384xf32, #tpu.memory_space<vmem>>, vector<8x384xf32>,
    %c0_25 = arith.constant 0 : index
    %c0_26 = arith.constant 0 : index
    %c38 = arith.constant 38 : index
    %24 = vector.load %arg1[%c0_25, %c0_26, %c38] : memref<1x8x432xf32, #tpu.memory_space<vmem>>, vector<1x8x384xf32>
    %25 = vector.shape_cast %24 : vector<1x8x384xf32> to vector<8x384xf32>
    %c64 = arith.constant 64 : index
    %c0_27 = arith.constant 0 : index
    %26 = vector.load %arg5[%c64, %c0_27] : memref<72x384xf32, #tpu.memory_space<vmem>>, vector<8x384xf32>
    tpu.vector_store %arg5[%c64, %c0_27], %25 {strides = array<i32>} : memref<72x384xf32, #tpu.memory_space<vmem>>, vector<8x384xf32>,
    %c0_28 = arith.constant 0 : index
    %c0_29 = arith.constant 0 : index
    %27 = vector.load %arg2[%c0_28, %c0_29] : memref<8x72xf32, #tpu.memory_space<vmem>>, vector<8x72xf32>
    %c0_30 = arith.constant 0 : index
    %c0_31 = arith.constant 0 : index
    %28 = vector.load %arg5[%c0_30, %c0_31] : memref<72x384xf32, #tpu.memory_space<vmem>>, vector<72x384xf32>
    %cst = arith.constant dense<0.000000e+00> : vector<8x384xf32>
    %29 = tpu.matmul %27, %28, %cst {dimension_numbers = #tpu.dot_dimension_numbers<[1], [0], [0], [1], [0, 0, 1, 1], [], []>} : vector<8x72xf32>, vector<72x384xf32>, vector<8x384xf32> -> vector<8x384xf32>
    %c0_32 = arith.constant 0 : index
    %c0_33 = arith.constant 0 : index
    %30 = vector.load %arg3[%c0_32, %c0_33] : memref<8x1xf32, #tpu.memory_space<vmem>>, vector<8x1xf32>
    %31 = vector.broadcast %30 : vector<8x1xf32> to vector<8x384xf32>
    %32 = arith.addf %29, %31 : vector<8x384xf32>
    %c0_34 = arith.constant 0 : index
    %c0_35 = arith.constant 0 : index
    %c0_36 = arith.constant 0 : index
    %33 = vector.load %arg4[%c0_34, %c0_35, %c0_36] : memref<1x8x384xf32, #tpu.memory_space<vmem>>, vector<1x8x384xf32>
    %34 = vector.shape_cast %33 : vector<1x8x384xf32> to vector<8x384xf32>
    %35 = vector.shape_cast %32 : vector<8x384xf32> to vector<1x8x384xf32>
    tpu.vector_store %arg4[%c0_34, %c0_35, %c0_36], %35 {strides = array<i32>} : memref<1x8x384xf32, #tpu.memory_space<vmem>>, vector<1x8x384xf32>,
    return
  }
  func.func @transform_0(%arg0: i32) -> (i32, i32, i32) {
    %c0_i32 = arith.constant 0 : i32
    %c0_i32_0 = arith.constant 0 : i32
    %c0_i32_1 = arith.constant 0 : i32
    return %arg0, %c0_i32, %c0_i32_0 : i32, i32, i32
  }
  func.func @transform_1(%arg0: i32) -> (i32, i32) {
    %c0_i32 = arith.constant 0 : i32
    %c0_i32_0 = arith.constant 0 : i32
    %c0_i32_1 = arith.constant 0 : i32
    return %c0_i32, %c0_i32_0 : i32, i32
  }
  func.func @transform_2(%arg0: i32) -> (i32, i32) {
    %c0_i32 = arith.constant 0 : i32
    %c0_i32_0 = arith.constant 0 : i32
    %c0_i32_1 = arith.constant 0 : i32
    return %c0_i32, %c0_i32_0 : i32, i32
  }
  func.func @transform_3(%arg0: i32) -> (i32, i32, i32) {
    %c0_i32 = arith.constant 0 : i32
    %c0_i32_0 = arith.constant 0 : i32
    %c0_i32_1 = arith.constant 0 : i32
    return %arg0, %c0_i32, %c0_i32_0 : i32, i32, i32
  }
}

</mosaic_0001>

<bundles_post_ra>
// kernel: tpu_custom_call.1
= control target key start
LH: loop header
LB: loop body
LE: loop exit
PB: predicated region body
PF: predicated region fallthrough
CT: control target
= control target key end

     0   :  { %8 = vsyncpa [#allocation4], 0  ;;  %s1050_s0 = inlined_call_operand.hbm [shape: f32[2,8,432], index: 0, kind: input, shape index: {}]   ;;  %s1051_s1 = inlined_call_operand.vmem [shape: f32[8,72], index: 1, kind: input, shape index: {}]   ;;  %s1052_s2 = inlined_call_operand.vmem [shape: f32[8,1], index: 2, kind: input, shape index: {}]   ;;  %s1053_s3 = inlined_call_operand.hbm [shape: f32[2,8,384], index: 3, kind: output, shape index: {}]  }
   0x1   :  { %10 = vsyncpa [#allocation4 + $0x1], 0 }
   0x2   :  { %11 = vsyncpa [#allocation5], 0 }
   0x3   :  { %13 = vsyncpa [#allocation5 + $0x1], 0  ;;  %s872_s12 = smov 0   ;;  %s874_s13 = smov 0  }
   0x4   :  { %s876_s14 = smov 0   ;;  %s878_s15 = smov 0  }
   0x5 LB: > { %s893_s16 = sadd.s32 4294967295, %s841_s15   ;;  %s591_s17 = sadd.s32 4294967294, %s841_s15   ;;  %s841_s15 = sphi %s878_s15, %s1063_s15   ;;  %s837_s14 = sphi %s876_s14, %s1062_s14   ;;  %s833_s13 = sphi %s874_s13, %s1061_s13   ;;  %s829_s12 = sphi %s872_s12, %s1060_s12  }
   0x6   : > { %s897_s18 = sadd.s32 1, %s841_s15   ;;  %s26_s19 = sadd.s32 1, %s837_s14 }
   0x7   : > { %s23_s20 = ssub.s32 %s841_s15, %s897_s18  ;;  %p33_p0 = scmp.ne.s32.totalorder %s837_s14, %s833_s13 }
   0x8   : > { %p24_p1 = scmp.eq.s32.totalorder %s23_s20, 0  ;;  %p34_p2 = scmp.eq.s32.totalorder %s841_s15, 0 }
   0x9   : > { %p39_p3 = scmp.ne.s32.totalorder %s833_s13, %s829_s12  ;;  %p40_p4 = scmp.eq.s32.totalorder %s893_s16, 0 }
   0xa   : > { %s909_s21 = scalar_select %p24_p1, %s837_s14, %s26_s19  }
   0xb   : > { %p911_p5 = por %p34_p2, %p33_p0  ;;  %p915_p6 = por %p40_p4, %p39_p3 }
   0xc   : > { %p105_p7 = scmp.eq.s32.totalorder %s893_s16, 1  ;;  %p111_p8 = scmp.eq.s32.totalorder %s591_s17, 1 }
   0xd   : > { %p620_p10 = scmp.lt.s32.totalorder %s841_s15, 2  ;;  %s137_s26 = sand.u32 1, %s837_s14  }
   0xe   : > { %p922_p11 = por %p105_p7, %p33_p0  ;;  %p926_p12 = por %p111_p8, %p39_p3 }
   0xf   : > { %s605_s27 = sshll.u32 %s841_s15, 5  ;;  %s594_s28 = sshll.u32 %s137_s26, 5 }
  0x10   : > { %s146_s4 = scalar_lea.hbm %s1050_s0, %s605_s27  ;;  %s141_s6 = scalar_lea.vmem [#allocation3], %s594_s28 }
  0x11   : > { %s148_s5 = sshll.u32 %s146_s4, 4  ;;  %s150_s7 = sshll.u32 %s141_s6, 4  ;;  %s149_s5 = int_to_ptr.hbm [resolvable:$true] %s148_s5  ;;  %s151_s7 = int_to_ptr.vmem [resolvable:$true] %s150_s7 }
  0x12   : > { %p937_p13 = pnand %p620_p10, %p911_p5  ;;  %p597_p0 = scmp.ge.s32.totalorder %s841_s15, 1 }
  0x13   : > { %p155_p1 = scmp.lt.s32.totalorder %s841_s15, 3  ;;  %s138_s9 = scalar_lea.sflag [#allocation4], %s137_s26 }
  0x14   : > { %s745_s10 = sshra.s32 %s149_s5, 4  ;;  %p749_p3 = pneg %p937_p13  ;;  %s746_s10 = int_to_ptr.hbm [resolvable:$true] %s745_s10 }
  0x15   : > { %s747_s11 = scalar_lea.hbm %s746_s10, 32  ;;  %s752_s20 = scalar_lea.hbm %s1050_s0, 64 }
  0x16   : > { %p748_p2 = scmp.ne.s32.totalorder %s746_s10, %s747_s11  ;;  %p753_p5 = scmp.lt.s32.totalorder %s746_s10, %s1050_s0 }
  0x17   : > { %p754_p8 = scmp.lt.s32.totalorder %s752_s20, %s747_s11 }
  0x18   : > { %p750_p4 = pnand %p749_p3, %p748_p2 }
  0x19   : > { %p755_p10 = por %p754_p8, %p753_p5 }
  0x1a   : > { %p751_p7 = pneg %p750_p4 }
  0x1c   : > { %p756_p9 = pnand %p755_p10, %p751_p7 }
  0x1e   : > { %759 = shalt.err (!%p756_p9)
}
  0x1f   : > { %615 = dma.hbm_to_vmem [thread:$0]  (!%p937_p13), %s149_s5, 512, %s151_s7, %s138_s9  }
  0x20   : > { %p156_p2 = pnand %p597_p0, %p155_p1 }
  0x21   : > { %s958_s26 = sand.u32 (!%p156_p2), 1, %s833_s13  }
  0x22   : > { %159 = sbr.rel (%p156_p2) target bundleno = 336 (0x150), region = 32  ;;  %s598_s28 = sshll.u32 (!%p156_p2), %s958_s26, 5 }
  0x23   : > { %s162_s29 = scalar_lea.sflag (!%p156_p2), [#allocation4], %s958_s26  ;;  %s165_s30 = scalar_lea.vmem (!%p156_p2), [#allocation3], %s598_s28 }
  0x27   : > { %820 = dma.done.wait (%p915_p6), %s162_s29, 512  }
  0x28   : > { %822 = vsyncadd (%p915_p6), %s162_s29, 4294966784  ;;  %v966_v0 = vld [vmem:[%s165_s30 + $0x10] sm:$0xff]  ;;  %v380_v1 = vld [vmem:[%s165_s30 + $0x18] sm:$0xff]  ;;  %s843_s4 = smov 90   ;;  %s844_s5 = smov 92   ;;  %vm393_vm0 = vcmask 736256  }
  0x29   : > { %v968_v2 = vld [vmem:[%s165_s30] sm:$0xff]  ;;  %v663_v3 = vpack.i.bf16 %v380_v1, %v966_v0  ;;  %v971_v4 = vld [vmem:[%s165_s30 + $0x8] sm:$0xff]  ;;  %s845_s6 = smov 91   ;;  %s846_s23 = smov 108   ;;  %vm367_vm1 = vcmask 744448   ;;  %vm341_vm2 = vcmask 752640  }
  0x2a   : > { %v683_v5 = vpack.i.bf16 %v971_v4, %v968_v2  ;;  %s847_s7 = smov 109   ;;  %s848_s8 = smov 110   ;;  %vm315_vm3 = vcmask 883712   ;;  %vm289_vm4 = vcmask 891904   ;;  %v431_v33 = vld [vmem:[%s1052_s2] sm:$0xff]  ;;  %vm263_vm5 = vcmask 900096  }
  0x2b   : > { %664 = vrot.lane.b32.xlu0 %v663_v3, %s843_s4  ;;  %674 = vrot.lane.b32.xlu1 %v663_v3, %s844_s5  ;;  %s849_s9 = smov 126   ;;  %s850_s10 = smov 127   ;;  %v851_v37 = vmov 0   ;;  %vm237_vm6 = vcmask 1031168   ;;  %vm211_vm7 = vcmask 1039360   ;;  %v403_v60 = vld [vmem:[%s1051_s1] sm:$0xff] }
  0x2c   : > { %684 = vrot.lane.b32.xlu2 %v683_v5, %s843_s4  ;;  %743 = vset.pattern.permute.xlu1 %v851_v37  ;;  %vm437_vm8 = vcmask 588800   ;;  %s606_s22 = smul.u32 24, %s958_s26 }
  0x2d   : > { %744 = vset.pattern.permute.xlu0 %v851_v37  ;;  %s607_s27 = smul.u32 24, %s893_s16 }
  0x2e   : > { %s188_s28 = scalar_lea.vmem [#allocation6], %s606_s22 }
  0x2f   : > { %s516_s4 = scalar_lea.hbm %s1053_s3, %s607_s27 }
  0x33   : > { %669 = vrot.lane.b32.xlu0 %v663_v3, %s845_s6  ;;  %679 = vrot.lane.b32.xlu1 %v663_v3, %s846_s23 }
  0x34   : > { %689 = vrot.lane.b32.xlu2 %v663_v3, %s847_s7 }
  0x3b   : > { %694 = vrot.lane.b32.xlu0 %v683_v5, %s845_s6  ;;  %699 = vrot.lane.b32.xlu1 %v663_v3, %s848_s8  ;;  %s520_s6 = sshll.u32 %s516_s4, 4  ;;  %s521_s6 = int_to_ptr.hbm [resolvable:$true] %s520_s6 }
  0x3c   : > { %704 = vrot.lane.b32.xlu2 %v683_v5, %s844_s5  ;;  %s518_s5 = sshll.u32 %s188_s28, 4  ;;  %s789_s16 = sshra.s32 %s521_s6, 4  ;;  %s519_s5 = int_to_ptr.vmem [resolvable:$true] %s518_s5  ;;  %s790_s16 = int_to_ptr.hbm [resolvable:$true] %s789_s16 }
  0x3d   : > { %p796_p0 = scmp.lt.s32.totalorder %s790_s16, %s1053_s3 }
  0x43   : > { %714 = vrot.lane.b32.xlu1 %v683_v5, %s846_s23  ;;  %709 = vrot.lane.b32.xlu0 %v663_v3, %s849_s9  ;;  %s505_s23 = scalar_lea.sflag [#allocation5], %s958_s26 }
  0x44   : > { %719 = vrot.lane.b32.xlu2 %v663_v3, %s850_s10 }
  0x4b   : > { %729 = vrot.lane.b32.xlu1 %v683_v5, %s848_s8  ;;  %724 = vrot.lane.b32.xlu0 %v683_v5, %s847_s7  ;;  %s791_s7 = scalar_lea.hbm %s790_s16, 24 }
  0x4c   : > { %734 = vrot.lane.b32.xlu2 %v683_v5, %s849_s9  ;;  %p792_p6 = scmp.ne.s32.totalorder %s790_s16, %s791_s7 }
  0x4e   : > { %p793_p9 = pnand %p792_p6, %p922_p11 }
  0x50   : > { %p794_p13 = pneg %p793_p9 }
  0x53   : > { %739 = vrot.lane.b32.xlu0 %v683_v5, %s850_s10  ;;  %434 = vperm.xlu1 %743, %v431_v33   ;;  %s795_s10 = scalar_lea.hbm %s1053_s3, 48 }
  0x54   : > { %p797_p1 = scmp.lt.s32.totalorder %s795_s10, %s791_s7 }
  0x56   : > { %p798_p3 = por %p797_p1, %p796_p0 }
  0x58   : > { %p799_p4 = pnand %p798_p3, %p794_p13 }
  0x86   : > { %v685_v6 = vpop.permute.xlu2 %684 }
  0x87   : > { %v687_v7 = vunpack.i.h.bf16 %v685_v6  ;;  %v686_v8 = vunpack.i.l.bf16 %v685_v6 }
  0x89   : > { %v394_v9 = vsel %vm393_vm0, %v686_v8, %v687_v7 }
  0x8a   : > { %448 = vmatpush.msra.mxu0 %v394_v9 }
  0x8e   : > { %v975_v14 = vpop.permute.xlu2 %689 }
  0x8f   : > { %v692_v25 = vunpack.i.h.bf16 %v975_v14  ;;  %v691_v26 = vunpack.i.l.bf16 %v975_v14 }
  0x91   : > { %v292_v32 = vsel %vm289_vm4, %v691_v26, %v692_v25 }
  0x96   : > { %v705_v28 = vpop.permute.xlu2 %704 }
  0x97   : > { %v706_v31 = vunpack.i.l.bf16 %v705_v28  ;;  %v707_v34 = vunpack.i.h.bf16 %v705_v28 }
  0x99   : > { %v342_v45 = vsel %vm341_vm2, %v706_v31, %v707_v34 }
  0x9d   : > { %v665_v10 = vpop.permute.xlu0 %664  ;;  %v675_v11 = vpop.permute.xlu1 %674 }
  0x9e   : > { %v667_v12 = vunpack.i.h.bf16 %v665_v10  ;;  %v666_v13 = vunpack.i.l.bf16 %v665_v10  ;;  %v677_v17 = vunpack.i.h.bf16 %v675_v11  ;;  %v676_v18 = vunpack.i.l.bf16 %v675_v11  ;;  %v720_v46 = vpop.permute.xlu2 %719 }
  0x9f   : > { %v722_v48 = vunpack.i.h.bf16 %v720_v46  ;;  %v721_v49 = vunpack.i.l.bf16 %v720_v46 }
  0xa0   : > { %v395_v15 = vsel %vm393_vm0, %v687_v7, %v666_v13  ;;  %v396_v16 = vsel %vm393_vm0, %v666_v13, %v667_v12  ;;  %v344_v29 = vsel %vm341_vm2, %v676_v18, %v677_v17  ;;  %v343_v47 = vsel %vm341_vm2, %v707_v34, %v676_v18 }
  0xa1   : > { %468 = vmatpush.msra.mxu1 %v395_v15  ;;  %488 = vmatpush.msra.mxu2 %v396_v16  ;;  %v214_v59 = vsel %vm211_vm7, %v721_v49, %v722_v48 }
  0xa5   : > { %v670_v19 = vpop.permute.xlu0 %669  ;;  %v680_v20 = vpop.permute.xlu1 %679 }
  0xa6   : > { %v672_v21 = vunpack.i.h.bf16 %v670_v19  ;;  %v671_v22 = vunpack.i.l.bf16 %v670_v19  ;;  %v682_v23 = vunpack.i.h.bf16 %v680_v20  ;;  %v681_v24 = vunpack.i.l.bf16 %v680_v20  ;;  %v735_v61 = vpop.permute.xlu2 %734 }
  0xa7   : > { %v736_v62 = vunpack.i.l.bf16 %v735_v61  ;;  %v737_v8 = vunpack.i.h.bf16 %v735_v61 }
  0xa8   : > { %v370_v27 = vsel %vm367_vm1, %v671_v22, %v672_v21  ;;  %v318_v30 = vsel %vm315_vm3, %v681_v24, %v682_v23 }
  0xa9   : > { %489 = vmatpush.msra.mxu2 %v370_v27 }
  0xab   : > { %490 = vmatpush.msra.mxu2 %v344_v29 }
  0xad   : > { %v695_v35 = vpop.permute.xlu0 %694  ;;  %491 = vmatpush.msra.mxu2 %v318_v30  ;;  %v700_v36 = vpop.permute.xlu1 %699 }
  0xae   : > { %v697_v38 = vunpack.i.h.bf16 %v695_v35  ;;  %v696_v39 = vunpack.i.l.bf16 %v695_v35  ;;  %v702_v40 = vunpack.i.h.bf16 %v700_v36  ;;  %v701_v41 = vunpack.i.l.bf16 %v700_v36 }
  0xaf   : > { %492 = vmatpush.msra.mxu2 %v292_v32 }
  0xb0   : > { %v368_v42 = vsel %vm367_vm1, %v696_v39, %v697_v38  ;;  %v369_v43 = vsel %vm367_vm1, %v697_v38, %v671_v22  ;;  %v266_v44 = vsel %vm263_vm5, %v701_v41, %v702_v40 }
  0xb1   : > { %449 = vmatpush.msra.mxu0 %v368_v42  ;;  %469 = vmatpush.msra.mxu1 %v369_v43 }
  0xb2   : > { %493 = vmatpush.msra.mxu2 %v266_v44 }
  0xb3   : > { %470 = vmatpush.msra.mxu1 %v343_v47  ;;  %450 = vmatpush.msra.mxu0 %v342_v45 }
  0xb5   : > { %v715_v50 = vpop.permute.xlu1 %714  ;;  %v710_v51 = vpop.permute.xlu0 %709 }
  0xb6   : > { %v717_v52 = vunpack.i.h.bf16 %v715_v50  ;;  %v716_v53 = vunpack.i.l.bf16 %v715_v50  ;;  %v712_v54 = vunpack.i.h.bf16 %v710_v51  ;;  %v711_v55 = vunpack.i.l.bf16 %v710_v51 }
  0xb8   : > { %v317_v56 = vsel %vm315_vm3, %v717_v52, %v681_v24  ;;  %v240_v57 = vsel %vm237_vm6, %v711_v55, %v712_v54  ;;  %v316_v58 = vsel %vm315_vm3, %v716_v53, %v717_v52  ;;  %v239_v13 = vsel %vm237_vm6, %v737_v8, %v711_v55 }
  0xb9   : > { %471 = vmatpush.msra.mxu1 %v317_v56  ;;  %494 = vmatpush.msra.mxu2 %v240_v57 }
  0xba   : > { %451 = vmatpush.msra.mxu0 %v316_v58 }
  0xbb   : > { %495 = vmatpush.msra.mxu2 %v214_v59 }
  0xbd   : > { %v730_v63 = vpop.permute.xlu1 %729  ;;  %v725_v1 = vpop.permute.xlu0 %724  ;;  %496 = vmatpush.msra.mxu2 %v966_v0  ;;  %v238_v0 = vsel %vm237_vm6, %v736_v62, %v737_v8 }
  0xbe   : > { %v732_v3 = vunpack.i.h.bf16 %v730_v63  ;;  %v731_v5 = vunpack.i.l.bf16 %v730_v63  ;;  %v727_v6 = vunpack.i.h.bf16 %v725_v1  ;;  %v726_v7 = vunpack.i.l.bf16 %v725_v1  ;;  %601 = vmatmul.msk.f32.vlgmr.msra.gmra.mxu2 %vm437_vm8, %v403_v60 }
  0xc0   : > { %v290_v9 = vsel %vm289_vm4, %v726_v7, %v727_v6  ;;  %v291_v10 = vsel %vm289_vm4, %v727_v6, %v691_v26  ;;  %v264_v11 = vsel %vm263_vm5, %v731_v5, %v732_v3  ;;  %v265_v12 = vsel %vm263_vm5, %v732_v3, %v701_v41 }
  0xc1   : > { %452 = vmatpush.msra.mxu0 %v290_v9  ;;  %472 = vmatpush.msra.mxu1 %v291_v10 }
  0xc3   : > { %473 = vmatpush.msra.mxu1 %v265_v12  ;;  %453 = vmatpush.msra.mxu0 %v264_v11 }
  0xc5   : > { %474 = vmatpush.msra.mxu1 %v239_v13  ;;  %v740_v15 = vpop.permute.xlu0 %739  ;;  %454 = vmatpush.msra.mxu0 %v238_v0  ;;  %v435_v19 = vpop.permute.xlu1 %434 }
  0xc6   : > { %v742_v14 = vunpack.i.h.bf16 %v740_v15  ;;  %v741_v16 = vunpack.i.l.bf16 %v740_v15 }
  0xc8   : > { %v212_v17 = vsel %vm211_vm7, %v741_v16, %v742_v14  ;;  %v213_v18 = vsel %vm211_vm7, %v742_v14, %v721_v49 }
  0xc9   : > { %455 = vmatpush.msra.mxu0 %v212_v17  ;;  %475 = vmatpush.msra.mxu1 %v213_v18 }
  0xcb   : > { %456 = vmatpush.msra.mxu0 %v968_v2  ;;  %476 = vmatpush.msra.mxu1 %v971_v4 }
  0xcc   : > { %599 = vmatmul.msk.f32.vlgmr.msra.gmra.mxu0 %vm437_vm8, %v403_v60  ;;  %600 = vmatmul.msk.f32.vlgmr.msra.gmra.mxu1 %vm437_vm8, %v403_v60 }
 0x141   : > { %v498_v20 = vpop.f32.mrf.mxu2 }
 0x142   : > { %v499_v21 = vadd.f32 %v498_v20, %v435_v19 }
 0x144   : > { %503 = vst [vmem:[%s188_s28 + $0x10] sm:$0xff] %v499_v21 }
 0x149   : > { %v458_v2 = vpop.f32.mrf.mxu0  ;;  %v478_v4 = vpop.f32.mrf.mxu1 }
 0x14a   : > { %v459_v22 = vadd.f32 %v458_v2, %v435_v19  ;;  %v479_v23 = vadd.f32 %v478_v4, %v435_v19 }
 0x14c   : > { %501 = vst [vmem:[%s188_s28] sm:$0xff] %v459_v22 }
 0x14d   : > { %502 = vst [vmem:[%s188_s28 + $0x8] sm:$0xff] %v479_v23 }
 0x14e   : > { %802 = shalt.err (!%p799_p4)
}
 0x14f   : > { %610 = dma.vmem_to_hbm [thread:$0]  (%p922_p11), %s519_s5, 384, %s521_s6, %s505_s23  }
 0x150 PF: > { %s532_s26 = sand.u32 1, %s829_s12   ;;  %p1059_p7 = scmp.ge.s32.totalorder %s841_s15, 2 }
 0x151   : > { %s533_s19 = scalar_lea.sflag [#allocation5], %s532_s26 }
 0x152   : > { %p617_p5 = pnand %p1059_p7, %p926_p12 }
 0x154   : > { %p618_p8 = pneg %p617_p5 }
 0x156   : > { %824 = dma.done.wait (%p618_p8), %s533_s19, 384  }
 0x157   : > { %826 = vsyncadd (%p618_p8), %s533_s19, 4294966912  ;;  %p16_p10 = scmp.ge.s32.totalorder %s897_s18, 4   ;;  %s1060_s12 = smov %s833_s13 }
 0x158   : > { %s1061_s13 = smov %s837_s14  ;;  %s1062_s14 = smov %s909_s21 }
 0x159   : > { %s1063_s15 = smov %s897_s18  ;;  %18 = sbr.rel (!%p16_p10) target bundleno = 5 (0x5), region = 77 }
 0x15e   :  { %539 = vsyncpa [#allocation4], 1 }
 0x15f   :  { %541 = vsyncpa [#allocation4 + $0x1], 1 }
 0x160   :  { %542 = vsyncpa [#allocation5], 1 }
 0x161   :  { %544 = vsyncpa [#allocation5 + $0x1], 1 }

</bundles_post_ra>
